<compile_context>
chip_gen: v6e
topology: v6e:2x2x1
jax: 0.10.0
libtpu: 0.0.40
codegen_flags: <defaults>
</compile_context>

<pallas_src>
import functools

import jax
import jax.numpy as jnp
import numpy as np
from jax.experimental import pallas as pl
from jax.experimental.pallas import tpu as pltpu

LANES = 128
SUBLANES = 8


def content_loss_kernel(w_ref, x_ref, t_ref, out_ref, acc_ref, *,
                        steps, tile_rows, rows, need_mask):
    """One grid step of the scaled-MSE reduction.

    w_ref   : SMEM (1,)  f32   -> [weight]            (scalar prefetch)
    x_ref   : VMEM (tile_rows, 128) tile of flattened `input` (native dtype)
    t_ref   : VMEM (tile_rows, 128) tile of flattened `target * weight`
    out_ref : VMEM (8, 128) f32 per-chunk per-(sublane,lane) partial sums
    acc_ref : VMEM (8, 128) f32 running accumulator (scratch)
    """
    c = pl.program_id(0)          # chunk (parallel across TensorCores)
    k = pl.program_id(1)          # reduction step within the chunk

    @pl.when(k == 0)
    def _init():
        acc_ref[...] = jnp.zeros_like(acc_ref)

    w = w_ref[0]
    x = x_ref[...].astype(jnp.float32)
    t = t_ref[...].astype(jnp.float32)
    d = x * w - t                                   # fused VPU mul-sub

    if need_mask:
        # Ragged final tile / overrun grid points: zero out rows >= `rows`.
        tile_idx = c * steps + k
        valid = rows - tile_idx * tile_rows         # traced i32 scalar
        row_ids = jax.lax.broadcasted_iota(jnp.int32, d.shape, 0)
        d = jnp.where(row_ids < valid, d, 0.0)

    sq = d * d
    # VALU-only accumulation into an (8, 128) slab; no per-step XLU reduce.
    acc_ref[...] += sq.reshape(-1, SUBLANES, LANES).sum(axis=0)

    @pl.when(k == pl.num_programs(1) - 1)
    def _finalize():
        out_ref[...] = acc_ref[...]                 # full (8,128) unmasked store


def _round_up(x, m):
    return ((x + m - 1) // m) * m


def _default_num_chunks():
    """2 chunks on dual-TensorCore v7x, 1 on single-TC v5e/v6e."""
    try:
        kind = jax.devices()[0].device_kind.lower()
    except Exception:
        return 1
    return 2 if "v7" in kind else 1


def content_loss(x, target_scaled, weight, *, tile_rows=4096, num_chunks=None):
    """ContentLoss.forward: mean((x * weight - target_scaled)^2).

    `target_scaled` must already be `target * weight` (mirrors __init__).
    """
    assert x.shape == target_scaled.shape
    assert x.dtype == target_scaled.dtype
    n = x.size

    xf = jnp.ravel(x)                    # contiguous reshape: free in XLA
    tf = jnp.ravel(target_scaled)

    rows = pl.cdiv(n, LANES)
    if rows * LANES != n:
        # TODO(synk): lane-unaligned element counts pay one extra HBM pass for
        # this (tiny, <128-element) pad; conv feature maps never hit it.
        pad = rows * LANES - n
        xf = jnp.pad(xf, (0, pad))       # zero pads contribute (0*w - 0)^2 = 0
        tf = jnp.pad(tf, (0, pad))
    x2 = xf.reshape(rows, LANES)         # lane-dense slab, zero-copy
    t2 = tf.reshape(rows, LANES)

    # Tile sizing: multiple of the dtype's sublane packing (8 f32 / 16 bf16),
    # as large as requested but never (much) larger than the data.
    sub = max(SUBLANES, 32 // max(1, x2.dtype.itemsize))
    tile_rows = max(sub, min(int(tile_rows), _round_up(rows, sub)))
    tile_rows = _round_up(tile_rows, sub)

    total_tiles = pl.cdiv(rows, tile_rows)
    if num_chunks is None:
        num_chunks = _default_num_chunks()
    num_chunks = max(1, min(int(num_chunks), total_tiles))
    steps = pl.cdiv(total_tiles, num_chunks)

    overrun = num_chunks * steps > total_tiles
    need_mask = (rows % tile_rows != 0) or overrun

    if overrun:
        def tile_map(c, k, w):           # clamp fully-OOB grid points
            return (jnp.minimum(c * steps + k, total_tiles - 1), 0)
    else:
        def tile_map(c, k, w):
            return (c * steps + k, 0)

    scalars = jnp.asarray(weight, dtype=jnp.float32).reshape((1,))

    kernel = functools.partial(
        content_loss_kernel,
        steps=steps, tile_rows=tile_rows, rows=rows, need_mask=need_mask)

    bytes_per_elem = x2.dtype.itemsize
    partials = pl.pallas_call(
        kernel,
        out_shape=jax.ShapeDtypeStruct((num_chunks * SUBLANES, LANES),
                                       jnp.float32),
        grid_spec=pltpu.PrefetchScalarGridSpec(
            num_scalar_prefetch=1,
            grid=(num_chunks, steps),
            in_specs=[
                pl.BlockSpec((tile_rows, LANES), tile_map),
                pl.BlockSpec((tile_rows, LANES), tile_map),
            ],
            out_specs=pl.BlockSpec((SUBLANES, LANES), lambda c, k, w: (c, 0)),
            scratch_shapes=[pltpu.VMEM((SUBLANES, LANES), jnp.float32)],
        ),
        compiler_params=pltpu.CompilerParams(
            dimension_semantics=("parallel", "arbitrary")),
        cost_estimate=pl.CostEstimate(
            flops=4 * n,
            transcendentals=0,
            bytes_accessed=2 * n * bytes_per_elem + num_chunks * SUBLANES * LANES * 4),
    )(scalars, x2, t2)

    # Tiny final reduction (<= num_chunks*8*128 values) + mean normalization.
    return jnp.sum(partials) * (1.0 / n)


def content_loss_reference(x, target_scaled, weight):
    """Pure-JAX reference mirroring nn.MSELoss()(input * weight, target_scaled)."""
    xf = x.astype(jnp.float32)
    tf = target_scaled.astype(jnp.float32)
    return jnp.mean((xf * weight - tf) ** 2)


if __name__ == "__main__":
    key = jax.random.PRNGKey(0)
    kx1, kt1, kx2, kt2, kx3, kt3 = jax.random.split(key, 6)

    weight = 0.75

    # 1) Conv-feature-map style activations; small tiles + 2 chunks exercise
    #    both grid axes (parallel chunks + multi-step accumulator), unmasked path.
    x1 = jax.random.normal(kx1, (2, 4, 32, 32), jnp.float32)
    tgt1 = jax.random.normal(kt1, (2, 4, 32, 32), jnp.float32)
    tgt1_scaled = tgt1 * weight                      # ContentLoss.__init__
    loss1 = jax.jit(functools.partial(content_loss, tile_rows=8, num_chunks=2))(
        x1, tgt1_scaled, weight)
    jax.block_until_ready(loss1)
    np.testing.assert_allclose(
        np.asarray(loss1), np.asarray(content_loss_reference(x1, tgt1_scaled, weight)),
        rtol=1e-5, atol=1e-6)

    # 2) Odd, lane-unaligned shape: exercises the tiny pad + in-kernel row mask.
    x2 = jax.random.normal(kx2, (2, 3, 15, 17), jnp.float32)
    tgt2 = jax.random.normal(kt2, (2, 3, 15, 17), jnp.float32)
    tgt2_scaled = tgt2 * weight
    loss2 = jax.jit(content_loss)(x2, tgt2_scaled, weight)
    jax.block_until_ready(loss2)
    np.testing.assert_allclose(
        np.asarray(loss2), np.asarray(content_loss_reference(x2, tgt2_scaled, weight)),
        rtol=1e-5, atol=1e-6)

    # 3) Ragged tile count + chunk overrun (clamped index map, fully masked step)
    #    and a bf16 input streamed in its native dtype.
    x3 = jax.random.normal(kx3, (1, 1, 36, 128), jnp.float32)
    tgt3 = jax.random.normal(kt3, (1, 1, 36, 128), jnp.float32)
    tgt3_scaled = tgt3 * weight
    loss3 = jax.jit(functools.partial(content_loss, tile_rows=8, num_chunks=2))(
        x3, tgt3_scaled, weight)
    jax.block_until_ready(loss3)
    np.testing.assert_allclose(
        np.asarray(loss3), np.asarray(content_loss_reference(x3, tgt3_scaled, weight)),
        rtol=1e-5, atol=1e-6)

    x4 = x1.astype(jnp.bfloat16)
    tgt4_scaled = (tgt1.astype(jnp.bfloat16) * jnp.bfloat16(weight))
    loss4 = jax.jit(content_loss)(x4, tgt4_scaled, weight)
    jax.block_until_ready(loss4)
    np.testing.assert_allclose(
        np.asarray(loss4), np.asarray(content_loss_reference(x4, tgt4_scaled, weight)),
        rtol=1e-4, atol=1e-5)

    for v in (loss1, loss2, loss3, loss4):
        assert np.isfinite(np.asarray(v))
    print("KERNEL_OK")
</pallas_src>

<mosaic_0001>
module attributes {stable_mosaic.version = 11 : i64} {
  func.func @content_loss_kernel(%arg0: i32, %arg1: i32, %arg2: memref<1xf32, #tpu.memory_space<smem>>, %arg3: memref<8x128xf32, #tpu.memory_space<vmem>>, %arg4: memref<8x128xf32, #tpu.memory_space<vmem>>, %arg5: memref<8x128xf32, #tpu.memory_space<vmem>>, %arg6: memref<8x128xf32, #tpu.memory_space<vmem>>) attributes {dimension_semantics = [#tpu.dimension_semantics<parallel>, #tpu.dimension_semantics<arbitrary>], iteration_bounds = array<i64: 2, 4>, scalar_prefetch = 1 : i64, scratch_operands = 1 : i64, tpu.core_type = #tpu.core_type<tc>, window_params = [{transform_indices = @transform_0, window_bounds = array<i64: 8, 128>}, {transform_indices = @transform_1, window_bounds = array<i64: 8, 128>}, {transform_indices = @transform_2, window_bounds = array<i64: 8, 128>}]} {
    %c0_i32 = arith.constant 0 : i32
    %0 = arith.cmpi eq, %arg1, %c0_i32 : i32
    %1 = arith.extui %0 : i1 to i32
    %c0_i32_0 = arith.constant 0 : i32
    %2 = arith.cmpi ne, %1, %c0_i32_0 : i32
    scf.if %2 {
      %cst_10 = arith.constant 0.000000e+00 : f32
      %18 = vector.broadcast %cst_10 : f32 to vector<8x128xf32>
      %c0_11 = arith.constant 0 : index
      %c0_12 = arith.constant 0 : index
      %19 = vector.load %arg6[%c0_11, %c0_12] : memref<8x128xf32, #tpu.memory_space<vmem>>, vector<8x128xf32>
      tpu.vector_store %arg6[%c0_11, %c0_12], %18 {strides = array<i32>} : memref<8x128xf32, #tpu.memory_space<vmem>>, vector<8x128xf32>,
    } else {
    }
    %c0 = arith.constant 0 : index
    %3 = memref.load %arg2[%c0] : memref<1xf32, #tpu.memory_space<smem>>
    %c0_1 = arith.constant 0 : index
    %c0_2 = arith.constant 0 : index
    %4 = vector.load %arg3[%c0_1, %c0_2] : memref<8x128xf32, #tpu.memory_space<vmem>>, vector<8x128xf32>
    %c0_3 = arith.constant 0 : index
    %c0_4 = arith.constant 0 : index
    %5 = vector.load %arg4[%c0_3, %c0_4] : memref<8x128xf32, #tpu.memory_space<vmem>>, vector<8x128xf32>
    %6 = vector.broadcast %3 : f32 to vector<8x128xf32>
    %7 = arith.mulf %4, %6 : vector<8x128xf32>
    %8 = arith.subf %7, %5 : vector<8x128xf32>
    %9 = arith.mulf %8, %8 : vector<8x128xf32>
    %c0_5 = arith.constant 0 : index
    %c0_6 = arith.constant 0 : index
    %10 = vector.load %arg6[%c0_5, %c0_6] : memref<8x128xf32, #tpu.memory_space<vmem>>, vector<8x128xf32>
    %11 = vector.shape_cast %9 : vector<8x128xf32> to vector<1x8x128xf32>
    %cst = arith.constant dense<0.000000e+00> : vector<8x128xf32>
    %12 = vector.multi_reduction <add>, %11, %cst [0] : vector<1x8x128xf32> to vector<8x128xf32>
    %13 = arith.addf %10, %12 : vector<8x128xf32>
    %c0_7 = arith.constant 0 : index
    %c0_8 = arith.constant 0 : index
    %14 = vector.load %arg6[%c0_7, %c0_8] : memref<8x128xf32, #tpu.memory_space<vmem>>, vector<8x128xf32>
    tpu.vector_store %arg6[%c0_7, %c0_8], %13 {strides = array<i32>} : memref<8x128xf32, #tpu.memory_space<vmem>>, vector<8x128xf32>,
    %c3_i32 = arith.constant 3 : i32
    %15 = arith.cmpi eq, %arg1, %c3_i32 : i32
    %16 = arith.extui %15 : i1 to i32
    %c0_i32_9 = arith.constant 0 : i32
    %17 = arith.cmpi ne, %16, %c0_i32_9 : i32
    scf.if %17 {
      %c0_10 = arith.constant 0 : index
      %c0_11 = arith.constant 0 : index
      %18 = vector.load %arg6[%c0_10, %c0_11] : memref<8x128xf32, #tpu.memory_space<vmem>>, vector<8x128xf32>
      %c0_12 = arith.constant 0 : index
      %c0_13 = arith.constant 0 : index
      %19 = vector.load %arg5[%c0_12, %c0_13] : memref<8x128xf32, #tpu.memory_space<vmem>>, vector<8x128xf32>
      tpu.vector_store %arg5[%c0_12, %c0_13], %18 {strides = array<i32>} : memref<8x128xf32, #tpu.memory_space<vmem>>, vector<8x128xf32>,
    } else {
    }
    return
  }
  func.func @transform_0(%arg0: i32, %arg1: i32, %arg2: memref<1xf32, #tpu.memory_space<smem>>) -> (i32, i32) {
    %c4_i32 = arith.constant 4 : i32
    %0 = arith.muli %arg0, %c4_i32 : i32
    %1 = arith.addi %0, %arg1 : i32
    %c0_i32 = arith.constant 0 : i32
    %c0_i32_0 = arith.constant 0 : i32
    return %1, %c0_i32 : i32, i32
  }
  func.func @transform_1(%arg0: i32, %arg1: i32, %arg2: memref<1xf32, #tpu.memory_space<smem>>) -> (i32, i32) {
    %c4_i32 = arith.constant 4 : i32
    %0 = arith.muli %arg0, %c4_i32 : i32
    %1 = arith.addi %0, %arg1 : i32
    %c0_i32 = arith.constant 0 : i32
    %c0_i32_0 = arith.constant 0 : i32
    return %1, %c0_i32 : i32, i32
  }
  func.func @transform_2(%arg0: i32, %arg1: i32, %arg2: memref<1xf32, #tpu.memory_space<smem>>) -> (i32, i32) {
    %c0_i32 = arith.constant 0 : i32
    %c0_i32_0 = arith.constant 0 : i32
    return %arg0, %c0_i32 : i32, i32
  }
}

</mosaic_0001>

<bundles_post_ra>
// kernel: content_loss.1
= control target key start
LH: loop header
LB: loop body
LE: loop exit
PB: predicated region body
PF: predicated region fallthrough
CT: control target
= control target key end

     0   :  { %s419_s14 = smov 0   ;;  %s421_s15 = smov 0   ;;  %s478_s0 = inlined_call_operand.<no memory space> [shape: f32[1], index: 0, kind: input, shape index: {}]   ;;  %s479_s1 = inlined_call_operand.vmem [shape: f32[64,128], index: 1, kind: input, shape index: {}]   ;;  %s480_s2 = inlined_call_operand.vmem [shape: f32[64,128], index: 2, kind: input, shape index: {}]   ;;  %s481_s3 = inlined_call_operand.vmem [shape: f32[16,128], index: 3, kind: output, shape index: {}]  }
   0x1   :  { %8 = sst [smem:[#allocation4]] %s478_s0  ;;  %s423_s16 = smov 0  }
   0x2   :  { %s425_s17 = smov 0   ;;  %s427_s18 = smov 0  }
   0x3 LB: > { %s23_s0 = sadd.s32 1, %s385_s16  ;;  %s26_s19 = sadd.s32 1, %s389_s17  ;;  %s393_s18 = sphi %s427_s18, %s14_s18   ;;  %s389_s17 = sphi %s425_s17, %s485_s17   ;;  %s385_s16 = sphi %s423_s16, %s484_s16   ;;  %s381_s15 = sphi %s421_s15, %s483_s15   ;;  %s377_s14 = sphi %s419_s14, %s482_s14  }
   0x4   : > { %p24_p0 = scmp.ge.s32.totalorder %s23_s0, 4  ;;  %p304_p1 = scmp.ge.s32.totalorder %s393_s18, 1 }
   0x5   : > { %p150_p2 = scmp.lt.s32.totalorder %s393_s18, 9 }
   0x6   : > { %s487_s0 = smov (%p24_p0, %s23_s0), 0  ;;  %s489_s19 = smov (!%p24_p0, %s26_s19), %s389_s17 }
   0x7   : > { %p151_p3 = pnand %p304_p1, %p150_p2  ;;  %p28_p4 = scmp.ge.s32.totalorder %s489_s19, 2 }
   0x8   : > { %s305_s20 = sshll.u32 (!%p151_p3), %s381_s15, 2  ;;  %p194_p5 = scmp.lt.s32.totalorder (!%p151_p3), %s381_s15, 1 }
   0x9   : > { %s491_s19 = smov (%p28_p4, %s489_s19), 0  ;;  %154 = sbr.rel (%p151_p3) target bundleno = 48 (0x30), region = 28 }
   0xa   : > { %s179_s21 = sadd.s32 (!%p151_p3), %s377_s14, %s305_s20  ;;  %p310_p7 = scmp.ne.s32.totalorder (!%p151_p3), %s377_s14, 0 }
   0xb   : > { %p180_p6 = scmp.lt.s32.totalorder (!%p151_p3), %s179_s21, 7 }
   0xe   : > { %s493_s15 = smov (!%p194_p5, %s381_s15), 1  ;;  %s495_s21 = smov (!%p180_p6, %s179_s21), 7 }
   0xf   : > { %s309_s22 = sshll.u32 %s493_s15, 3  ;;  %s306_s23 = sshll.u32 %s495_s21, 3 }
  0x10   : > { %s197_s26 = scalar_lea.vmem %s481_s3, %s309_s22  ;;  %s183_s29 = scalar_lea.vmem %s479_s1, %s306_s23 }
  0x11   : > { %s191_s5 = scalar_lea.vmem %s480_s2, %s306_s23  ;;  %201 = sbr.rel (%p310_p7) target bundleno = 24 (0x18), region = 32 }
  0x16   : > { %v395_v0 = vmov 0.0  }
  0x17   : > { %202 = vst [vmem:[#allocation2] sm:$0xff] %v395_v0 }
  0x18 PF: > { %s203_s6 = sld [smem:[#allocation4]]  ;;  %v204_v1 = vld [vmem:[%s183_s29] sm:$0xff]  ;;  %p311_p8 = scmp.ne.s32.totalorder %s377_s14, 3 }
  0x19   : > { %v205_v2 = vld [vmem:[%s191_s5] sm:$0xff] }
  0x1e   : > { %v206_v3 = vstv %s203_s6  ;;  %v210_v6 = vld [vmem:[#allocation2] sm:$0xff] }
  0x1f   : > { %v207_v4 = vmul.f32 %v206_v3, %v204_v1 }
  0x21   : > { %v208_v5 = vsub.f32 %v207_v4, %v205_v2 }
  0x23   : > { %v209_v7 = vmul.f32 %v208_v5, %v208_v5  ;;  %217 = sbr.rel (%p311_p8) target bundleno = 48 (0x30), region = 36 }
  0x25   : > { %v212_v8 = vadd.f32 %v210_v6, %v209_v7 }
  0x27   : > { %213 = vst [vmem:[#allocation2] sm:$0xff] %v212_v8 }
  0x2e   : > { %v218_v9 = vld [vmem:[#allocation2] sm:$0xff] }
  0x2f   : > { %219 = vst [vmem:[%s197_s26] sm:$0xff] %v218_v9 }
  0x30 PF: > { %s14_s18 = sadd.s32 1, %s393_s18   ;;  %s482_s14 = smov %s385_s16 }
  0x31   : > { %p11_p9 = scmp.ge.s32.totalorder %s14_s18, 10   ;;  %s483_s15 = smov %s389_s17 }
  0x32   : > { %s484_s16 = smov %s487_s0  ;;  %s485_s17 = smov %s491_s19 }
  0x33   :  { %13 = sbr.rel (!%p11_p9) target bundleno = 3 (0x3), region = 69 }

</bundles_post_ra>
